<compile_context>
chip_gen: v5e
topology: v5e:2x2
jax: 0.10.0
libtpu: 0.0.40
codegen_flags: <defaults>
</compile_context>

<pallas_src>
import jax
import jax.numpy as jnp
from jax.experimental import pallas as pl
from jax.experimental.pallas import tpu as pltpu

# ---------------- problem sizes (small, self-consistent) ----------------
B = 2          # batch
C_IN = 8       # num_features_in  (== num_features_out so the residual add is valid)
C_OUT = 8      # num_features_out
C_RES = 16     # res_features
T = 128        # timesteps (one full lane tile per batch element)
K = 3          # filter_len
DIL = 2        # dilation  (DIL*(K-1) even -> PyTorch residual slicing well-defined)
T_OUT = T - DIL * (K - 1)
PAD = (T - T_OUT) // 2
EPS = 1e-5


def _make_kernel(b, c_in, c_out, c_res, t, k, dil, pad, eps):
    n = b * t                   # lane width of the batch-concatenated workspace
    t_out = t - dil * (k - 1)
    cg = k * c_in + 1           # gate-matmul contraction dim (taps + ones row)
    cp = c_out + 1              # post-matmul contraction dim (gated + ones row)
    col_gamma = cg              # param-pack column holding gamma
    col_beta = cg + 1           # param-pack column holding beta
    r_post = 2 * c_out          # first row of the fused 1x1 weights in the pack

    def kernel(x_ref, res_ref, p_ref, xo_ref, ro_ref):
        p = p_ref[...]                                               # (40, 27) pack

        # ---- concatenate batch along the lane axis (128-aligned pieces) ----
        xcat = jnp.concatenate([x_ref[i] for i in range(b)], axis=-1)  # (C_in, B*T)

        # ---- BatchNorm1d: one-pass batch stats (biased var), single FMA ----
        inv_n = 1.0 / n
        s1 = jnp.sum(xcat, axis=-1, keepdims=True)                   # both reduces
        s2 = jnp.sum(xcat * xcat, axis=-1, keepdims=True)            # issue together
        mean = s1 * inv_n
        var = s2 * inv_n - mean * mean                               # biased
        gamma = p[0:c_in, col_gamma:col_gamma + 1]                   # (C_in, 1)
        beta = p[0:c_in, col_beta:col_beta + 1]                      # (C_in, 1)
        scale = gamma * jax.lax.rsqrt(var + eps)
        xn = xcat * scale + (beta - mean * scale)                    # (C_in, B*T)

        # ---- im2col from XLU lane rotations; the residual pad is folded into
        #      the tap shifts.  Rolled lanes wrap across batch-tile edges only
        #      inside the `pad` edge lanes that the store loop discards. ----
        ones_row = jnp.ones((1, n), jnp.float32)
        taps = []
        for kk in range(k):
            s = (pad - kk * dil) % n
            taps.append(xn if s == 0 else pltpu.roll(xn, shift=s, axis=1))
        im2col = jnp.concatenate(taps + [ones_row], axis=0)          # (K*C_in+1, B*T)

        # ---- tanh + sigmoid branches: one fused MXU matmul (bias folded) ----
        pre = jnp.dot(p[0:2 * c_out, 0:cg], im2col,
                      preferred_element_type=jnp.float32)            # (2*C_out, B*T)
        gated = jnp.tanh(pre[:c_out]) * jax.nn.sigmoid(pre[c_out:])  # (C_out,   B*T)

        # ---- 1x1 "lin" + "res" convs: one fused MXU matmul (bias folded) ----
        post = jnp.dot(p[r_post:r_post + c_out + c_res, 0:cp],
                       jnp.concatenate([gated, ones_row], axis=0),
                       preferred_element_type=jnp.float32)           # (C_out+C_res, B*T)

        # ---- residual adds + in-kernel crop to the valid conv window ----
        x_full = xn + post[:c_out]                                   # (C_out, B*T)
        for i in range(b):
            off = i * t + pad
            xo_ref[i] = x_full[:, off:off + t_out].astype(xo_ref.dtype)
            ro_ref[i] = (res_ref[i][:, pad:pad + t_out]
                         + post[c_out:, off:off + t_out]).astype(ro_ref.dtype)

    return kernel


@jax.jit
def wavenet_conv(x, res, params):
    """x: [B, C_IN, T] f32, res: [B, C_RES, T] f32 ->
       (x_out [B, C_OUT, T_OUT], res_out [B, C_RES, T_OUT])."""
    (gamma, beta, w_t, b_t, w_s, b_s, w_l, b_l, w_r, b_r) = params
    b_sz, c_in, t = x.shape
    c_res = res.shape[1]
    c_out, _, k = w_t.shape
    t_out = t - DIL * (k - 1)
    pad = (t - t_out) // 2
    assert c_in == c_out, "residual add requires num_features_in == num_features_out"

    f32 = jnp.float32
    # --- wrapper-side weight fusion + single packed parameter buffer ---
    # gated conv as one im2col matmul: w_gate[o, kk*C_in + i] = w[o, i, kk]
    w_gate = jnp.concatenate(
        [jnp.transpose(w_t, (0, 2, 1)).reshape(c_out, k * c_in),
         jnp.transpose(w_s, (0, 2, 1)).reshape(c_out, k * c_in)], axis=0)
    b_gate = jnp.concatenate([b_t, b_s]).reshape(2 * c_out, 1)
    # both 1x1 convs stacked: rows [0:C_out] -> conv_lin, rows [C_out:] -> conv_res
    w_post = jnp.concatenate([w_l[:, :, 0], w_r[:, :, 0]], axis=0)
    b_post = jnp.concatenate([b_l, b_r]).reshape(c_out + c_res, 1)

    cg = k * c_in + 1
    cp = c_out + 1
    n_rows = 2 * c_out + c_out + c_res          # 16 + 24 = 40
    n_cols = cg + 2                             # 25 + gamma col + beta col = 27
    pbuf = jnp.zeros((n_rows, n_cols), f32)
    pbuf = pbuf.at[0:2 * c_out, 0:cg].set(
        jnp.concatenate([w_gate, b_gate], axis=1).astype(f32))
    pbuf = pbuf.at[2 * c_out:n_rows, 0:cp].set(
        jnp.concatenate([w_post, b_post], axis=1).astype(f32))
    pbuf = pbuf.at[0:c_in, cg].set(gamma.astype(f32))
    pbuf = pbuf.at[0:c_in, cg + 1].set(beta.astype(f32))

    kernel = _make_kernel(b_sz, c_in, c_out, c_res, t, k, DIL, pad, EPS)

    vmem = pltpu.MemorySpace.VMEM
    # Outputs come out already cropped to the valid conv window (T_OUT lanes),
    # so no standalone XLA slice kernels run after the pallas_call.
    return pl.pallas_call(
        kernel,
        out_shape=(jax.ShapeDtypeStruct((b_sz, c_out, t_out), x.dtype),
                   jax.ShapeDtypeStruct((b_sz, c_res, t_out), res.dtype)),
        in_specs=[pl.BlockSpec(memory_space=vmem)] * 3,
        out_specs=(pl.BlockSpec(memory_space=vmem),
                   pl.BlockSpec(memory_space=vmem)),
    )(x, res, pbuf)


# ---------------- pure-JAX reference for a correctness check ----------------
def reference(x, res, params):
    (gamma, beta, w_t, b_t, w_s, b_s, w_l, b_l, w_r, b_r) = params
    hi = jax.lax.Precision.HIGHEST
    mean = jnp.mean(x, axis=(0, 2))
    var = jnp.var(x, axis=(0, 2))                      # biased, like PyTorch fwd
    xn = (x - mean[None, :, None]) / jnp.sqrt(var + EPS)[None, :, None]
    xn = xn * gamma[None, :, None] + beta[None, :, None]

    def dconv(inp, w, b, dil):
        t_out = inp.shape[-1] - dil * (w.shape[-1] - 1)
        out = b[None, :, None]
        for kk in range(w.shape[-1]):
            out = out + jnp.einsum('oi,bit->bot', w[:, :, kk],
                                   inp[:, :, kk * dil: kk * dil + t_out],
                                   precision=hi)
        return out

    gated = jnp.tanh(dconv(xn, w_t, b_t, DIL)) * jax.nn.sigmoid(dconv(xn, w_s, b_s, DIL))
    x_res = jnp.einsum('oi,bit->bot', w_r[:, :, 0], gated, precision=hi) + b_r[None, :, None]
    x_lin = jnp.einsum('oi,bit->bot', w_l[:, :, 0], gated, precision=hi) + b_l[None, :, None]
    pad = (xn.shape[-1] - x_lin.shape[-1]) // 2
    if pad > 0:
        return xn[:, :, pad:-pad] + x_lin, res[:, :, pad:-pad] + x_res
    return xn + x_lin, res + x_res


if __name__ == "__main__":
    key = jax.random.PRNGKey(0)
    ks = jax.random.split(key, 12)

    x = jax.random.normal(ks[0], (B, C_IN, T), jnp.float32)
    res = jax.random.normal(ks[1], (B, C_RES, T), jnp.float32)

    # deterministic parameter init (shapes follow nn.Conv1d / nn.BatchNorm1d)
    gamma = 1.0 + 0.1 * jax.random.normal(ks[2], (C_IN,), jnp.float32)
    beta = 0.1 * jax.random.normal(ks[3], (C_IN,), jnp.float32)
    w_t = 0.2 * jax.random.normal(ks[4], (C_OUT, C_IN, K), jnp.float32)
    b_t = 0.1 * jax.random.normal(ks[5], (C_OUT,), jnp.float32)
    w_s = 0.2 * jax.random.normal(ks[6], (C_OUT, C_IN, K), jnp.float32)
    b_s = 0.1 * jax.random.normal(ks[7], (C_OUT,), jnp.float32)
    w_l = 0.2 * jax.random.normal(ks[8], (C_OUT, C_OUT, 1), jnp.float32)
    b_l = 0.1 * jax.random.normal(ks[9], (C_OUT,), jnp.float32)
    w_r = 0.2 * jax.random.normal(ks[10], (C_RES, C_OUT, 1), jnp.float32)
    b_r = 0.1 * jax.random.normal(ks[11], (C_RES,), jnp.float32)

    params = (gamma, beta, w_t, b_t, w_s, b_s, w_l, b_l, w_r, b_r)

    x_out, res_out = jax.block_until_ready(wavenet_conv(x, res, params))
    x_ref_o, res_ref_o = jax.block_until_ready(reference(x, res, params))

    assert x_out.shape == (B, C_OUT, T_OUT) and res_out.shape == (B, C_RES, T_OUT)
    assert jnp.allclose(x_out, x_ref_o, atol=2e-4, rtol=2e-4)
    assert jnp.allclose(res_out, res_ref_o, atol=2e-4, rtol=2e-4)

    print("KERNEL_OK")
</pallas_src>

<mosaic_0001>
module attributes {stable_mosaic.version = 11 : i64} {
  func.func @kernel(%arg0: memref<2x8x128xf32, #tpu.memory_space<vmem>>, %arg1: memref<2x16x128xf32, #tpu.memory_space<vmem>>, %arg2: memref<40x27xf32, #tpu.memory_space<vmem>>, %arg3: memref<2x8x124xf32, #tpu.memory_space<vmem>>, %arg4: memref<2x16x124xf32, #tpu.memory_space<vmem>>) attributes {dimension_semantics = [], scalar_prefetch = 0 : i64, scratch_operands = 0 : i64, tpu.core_type = #tpu.core_type<tc>} {
    %c0 = arith.constant 0 : index
    %c0_0 = arith.constant 0 : index
    %0 = vector.load %arg2[%c0, %c0_0] : memref<40x27xf32, #tpu.memory_space<vmem>>, vector<40x27xf32>
    %c0_1 = arith.constant 0 : index
    %c0_2 = arith.constant 0 : index
    %c0_3 = arith.constant 0 : index
    %1 = vector.load %arg0[%c0_1, %c0_2, %c0_3] : memref<2x8x128xf32, #tpu.memory_space<vmem>>, vector<1x8x128xf32>
    %2 = vector.shape_cast %1 : vector<1x8x128xf32> to vector<8x128xf32>
    %c1 = arith.constant 1 : index
    %c0_4 = arith.constant 0 : index
    %c0_5 = arith.constant 0 : index
    %3 = vector.load %arg0[%c1, %c0_4, %c0_5] : memref<2x8x128xf32, #tpu.memory_space<vmem>>, vector<1x8x128xf32>
    %4 = vector.shape_cast %3 : vector<1x8x128xf32> to vector<8x128xf32>
    %5 = tpu.concatenate %2, %4 in 1 : vector<8x128xf32>, vector<8x128xf32> -> vector<8x256xf32>
    %cst = arith.constant dense<0.000000e+00> : vector<8xf32>
    %6 = vector.multi_reduction <add>, %5, %cst [1] : vector<8x256xf32> to vector<8xf32>
    %7 = vector.shape_cast %6 : vector<8xf32> to vector<8x1xf32>
    %8 = arith.mulf %5, %5 : vector<8x256xf32>
    %cst_6 = arith.constant dense<0.000000e+00> : vector<8xf32>
    %9 = vector.multi_reduction <add>, %8, %cst_6 [1] : vector<8x256xf32> to vector<8xf32>
    %10 = vector.shape_cast %9 : vector<8xf32> to vector<8x1xf32>
    %cst_7 = arith.constant 3.906250e-03 : f32
    %11 = vector.broadcast %cst_7 : f32 to vector<8x1xf32>
    %12 = arith.mulf %7, %11 : vector<8x1xf32>
    %cst_8 = arith.constant 3.906250e-03 : f32
    %13 = vector.broadcast %cst_8 : f32 to vector<8x1xf32>
    %14 = arith.mulf %10, %13 : vector<8x1xf32>
    %15 = arith.mulf %12, %12 : vector<8x1xf32>
    %16 = arith.subf %14, %15 : vector<8x1xf32>
    %17 = vector.extract_strided_slice %0 {offsets = [0, 25], sizes = [8, 1], strides = [1, 1]} : vector<40x27xf32> to vector<8x1xf32>
    %18 = vector.extract_strided_slice %0 {offsets = [0, 26], sizes = [8, 1], strides = [1, 1]} : vector<40x27xf32> to vector<8x1xf32>
    %cst_9 = arith.constant 9.99999974E-6 : f32
    %19 = vector.broadcast %cst_9 : f32 to vector<8x1xf32>
    %20 = arith.addf %16, %19 : vector<8x1xf32>
    %21 = math.rsqrt %20 : vector<8x1xf32>
    %22 = arith.mulf %17, %21 : vector<8x1xf32>
    %23 = vector.broadcast %22 : vector<8x1xf32> to vector<8x256xf32>
    %24 = arith.mulf %5, %23 : vector<8x256xf32>
    %25 = arith.mulf %12, %22 : vector<8x1xf32>
    %26 = arith.subf %18, %25 : vector<8x1xf32>
    %27 = vector.broadcast %26 : vector<8x1xf32> to vector<8x256xf32>
    %28 = arith.addf %24, %27 : vector<8x256xf32>
    %cst_10 = arith.constant 1.000000e+00 : f32
    %29 = vector.broadcast %cst_10 : f32 to vector<1x256xf32>
    %c2_i32 = arith.constant 2 : i32
    %30 = tpu.dynamic_rotate %28 by %c2_i32 dim 1 : vector<8x256xf32>, i32 -> vector<8x256xf32>
    %c254_i32 = arith.constant 254 : i32
    %31 = tpu.dynamic_rotate %28 by %c254_i32 dim 1 : vector<8x256xf32>, i32 -> vector<8x256xf32>
    %32 = tpu.concatenate %30, %28, %31, %29 in 0 : vector<8x256xf32>, vector<8x256xf32>, vector<8x256xf32>, vector<1x256xf32> -> vector<25x256xf32>
    %33 = vector.extract_strided_slice %0 {offsets = [0, 0], sizes = [16, 25], strides = [1, 1]} : vector<40x27xf32> to vector<16x25xf32>
    %cst_11 = arith.constant dense<0.000000e+00> : vector<16x256xf32>
    %34 = tpu.matmul %33, %32, %cst_11 {dimension_numbers = #tpu.dot_dimension_numbers<[1], [0], [0], [1], [0, 0, 1, 1], [], []>} : vector<16x25xf32>, vector<25x256xf32>, vector<16x256xf32> -> vector<16x256xf32>
    %35 = vector.extract_strided_slice %34 {offsets = [0, 0], sizes = [8, 256], strides = [1, 1]} : vector<16x256xf32> to vector<8x256xf32>
    %36 = math.tanh %35 : vector<8x256xf32>
    %37 = vector.extract_strided_slice %34 {offsets = [8, 0], sizes = [8, 256], strides = [1, 1]} : vector<16x256xf32> to vector<8x256xf32>
    %38 = arith.negf %37 : vector<8x256xf32>
    %39 = math.exp %38 : vector<8x256xf32>
    %cst_12 = arith.constant 1.000000e+00 : f32
    %40 = vector.broadcast %cst_12 : f32 to vector<8x256xf32>
    %41 = arith.addf %40, %39 : vector<8x256xf32>
    %42 = arith.divf %40, %41 : vector<8x256xf32>
    %43 = arith.mulf %36, %42 : vector<8x256xf32>
    %44 = vector.extract_strided_slice %0 {offsets = [16, 0], sizes = [24, 9], strides = [1, 1]} : vector<40x27xf32> to vector<24x9xf32>
    %45 = tpu.concatenate %43, %29 in 0 : vector<8x256xf32>, vector<1x256xf32> -> vector<9x256xf32>
    %cst_13 = arith.constant dense<0.000000e+00> : vector<24x256xf32>
    %46 = tpu.matmul %44, %45, %cst_13 {dimension_numbers = #tpu.dot_dimension_numbers<[1], [0], [0], [1], [0, 0, 1, 1], [], []>} : vector<24x9xf32>, vector<9x256xf32>, vector<24x256xf32> -> vector<24x256xf32>
    %47 = vector.extract_strided_slice %46 {offsets = [0, 0], sizes = [8, 256], strides = [1, 1]} : vector<24x256xf32> to vector<8x256xf32>
    %48 = arith.addf %28, %47 : vector<8x256xf32>
    %49 = vector.extract_strided_slice %48 {offsets = [0, 2], sizes = [8, 124], strides = [1, 1]} : vector<8x256xf32> to vector<8x124xf32>
    %c0_14 = arith.constant 0 : index
    %c0_15 = arith.constant 0 : index
    %c0_16 = arith.constant 0 : index
    %50 = vector.load %arg3[%c0_14, %c0_15, %c0_16] : memref<2x8x124xf32, #tpu.memory_space<vmem>>, vector<1x8x124xf32>
    %51 = vector.shape_cast %50 : vector<1x8x124xf32> to vector<8x124xf32>
    %52 = vector.shape_cast %49 : vector<8x124xf32> to vector<1x8x124xf32>
    tpu.vector_store %arg3[%c0_14, %c0_15, %c0_16], %52 {strides = array<i32>} : memref<2x8x124xf32, #tpu.memory_space<vmem>>, vector<1x8x124xf32>,
    %c0_17 = arith.constant 0 : index
    %c0_18 = arith.constant 0 : index
    %c0_19 = arith.constant 0 : index
    %53 = vector.load %arg1[%c0_17, %c0_18, %c0_19] : memref<2x16x128xf32, #tpu.memory_space<vmem>>, vector<1x16x128xf32>
    %54 = vector.shape_cast %53 : vector<1x16x128xf32> to vector<16x128xf32>
    %55 = vector.extract_strided_slice %54 {offsets = [0, 2], sizes = [16, 124], strides = [1, 1]} : vector<16x128xf32> to vector<16x124xf32>
    %56 = vector.extract_strided_slice %46 {offsets = [8, 2], sizes = [16, 124], strides = [1, 1]} : vector<24x256xf32> to vector<16x124xf32>
    %57 = arith.addf %55, %56 : vector<16x124xf32>
    %c0_20 = arith.constant 0 : index
    %c0_21 = arith.constant 0 : index
    %c0_22 = arith.constant 0 : index
    %58 = vector.load %arg4[%c0_20, %c0_21, %c0_22] : memref<2x16x124xf32, #tpu.memory_space<vmem>>, vector<1x16x124xf32>
    %59 = vector.shape_cast %58 : vector<1x16x124xf32> to vector<16x124xf32>
    %60 = vector.shape_cast %57 : vector<16x124xf32> to vector<1x16x124xf32>
    tpu.vector_store %arg4[%c0_20, %c0_21, %c0_22], %60 {strides = array<i32>} : memref<2x16x124xf32, #tpu.memory_space<vmem>>, vector<1x16x124xf32>,
    %61 = vector.extract_strided_slice %48 {offsets = [0, 130], sizes = [8, 124], strides = [1, 1]} : vector<8x256xf32> to vector<8x124xf32>
    %c1_23 = arith.constant 1 : index
    %c0_24 = arith.constant 0 : index
    %c0_25 = arith.constant 0 : index
    %62 = vector.load %arg3[%c1_23, %c0_24, %c0_25] : memref<2x8x124xf32, #tpu.memory_space<vmem>>, vector<1x8x124xf32>
    %63 = vector.shape_cast %62 : vector<1x8x124xf32> to vector<8x124xf32>
    %64 = vector.shape_cast %61 : vector<8x124xf32> to vector<1x8x124xf32>
    tpu.vector_store %arg3[%c1_23, %c0_24, %c0_25], %64 {strides = array<i32>} : memref<2x8x124xf32, #tpu.memory_space<vmem>>, vector<1x8x124xf32>,
    %c1_26 = arith.constant 1 : index
    %c0_27 = arith.constant 0 : index
    %c0_28 = arith.constant 0 : index
    %65 = vector.load %arg1[%c1_26, %c0_27, %c0_28] : memref<2x16x128xf32, #tpu.memory_space<vmem>>, vector<1x16x128xf32>
    %66 = vector.shape_cast %65 : vector<1x16x128xf32> to vector<16x128xf32>
    %67 = vector.extract_strided_slice %66 {offsets = [0, 2], sizes = [16, 124], strides = [1, 1]} : vector<16x128xf32> to vector<16x124xf32>
    %68 = vector.extract_strided_slice %46 {offsets = [8, 130], sizes = [16, 124], strides = [1, 1]} : vector<24x256xf32> to vector<16x124xf32>
    %69 = arith.addf %67, %68 : vector<16x124xf32>
    %c1_29 = arith.constant 1 : index
    %c0_30 = arith.constant 0 : index
    %c0_31 = arith.constant 0 : index
    %70 = vector.load %arg4[%c1_29, %c0_30, %c0_31] : memref<2x16x124xf32, #tpu.memory_space<vmem>>, vector<1x16x124xf32>
    %71 = vector.shape_cast %70 : vector<1x16x124xf32> to vector<16x124xf32>
    %72 = vector.shape_cast %69 : vector<16x124xf32> to vector<1x16x124xf32>
    tpu.vector_store %arg4[%c1_29, %c0_30, %c0_31], %72 {strides = array<i32>} : memref<2x16x124xf32, #tpu.memory_space<vmem>>, vector<1x16x124xf32>,
    return
  }
}

</mosaic_0001>

<bundles_post_ra>
// kernel: wavenet_conv.1
= control target key start
LH: loop header
LB: loop body
LE: loop exit
PB: predicated region body
PF: predicated region fallthrough
CT: control target
= control target key end

     0   :  { %10 = vsyncpa [#allocation3], 0  ;;  %s532_s0 = inlined_call_operand.vmem [shape: f32[2,8,128], index: 0, kind: input, shape index: {}]   ;;  %s533_s1 = inlined_call_operand.vmem [shape: f32[2,16,128], index: 1, kind: input, shape index: {}]   ;;  %s534_s2 = inlined_call_operand.vmem [shape: f32[40,27], index: 2, kind: input, shape index: {}]   ;;  %s535_s3 = inlined_call_operand.hbm [shape: f32[2,8,124], index: 3, kind: output, shape index: {0}]   ;;  %s536_s4 = inlined_call_operand.hbm [shape: f32[2,16,124], index: 4, kind: output, shape index: {1}]  }
   0x1   :  { %v23_v0 = vld [vmem:[%s532_s0] sm:$0xff]  ;;  %v327_v1 = vld [vmem:[%s532_s0 + $0x8] sm:$0xff] }
   0x2   :  { %11 = vsyncpa [#allocation5], 0  ;;  %v26_v2 = vadd.f32 %v327_v1, %v23_v0  ;;  %v29_v3 = vmul.f32 %v23_v0, %v23_v0  ;;  %v30_v4 = vmul.f32 %v327_v1, %v327_v1  ;;  %v435_v8 = vmov 25   ;;  %v18_v19 = vld [vmem:[%s534_s2] sm:$0xff]  ;;  %s436_s20 = smov 1   ;;  %s438_s21 = smov 2  }
   0x3   :  { %356 = vset.pattern.permute.xlu1 %v435_v8  ;;  %v437_v24 = vmov 26   ;;  %s439_s22 = smov 126   ;;  %vm93_vm3 = vcmask 1040384   ;;  %v440_v34 = vmov 1.0   ;;  %v74_v35 = vlaneseq  ;;  %v19_v47 = vld [vmem:[%s534_s2 + $0x8] sm:$0xff]  ;;  %s441_s12 = smov [#allocation2]  }
   0x4   :  { %27 = vadd.xlane.f32.xlu0 %v26_v2  ;;  %v31_v5 = vadd.f32 %v30_v4, %v29_v3  ;;  %357 = vset.pattern.permute.xlu2 %v437_v24  ;;  %vm86_vm6 = vcmask 203776   ;;  %vm185_vm15 = vcmask 72704   ;;  %s295_s13 = sshll.u32 %s441_s12, 4  ;;  %s442_s16 = smov 128   ;;  %s296_s13 = int_to_ptr.vmem [resolvable:$true] %s295_s13 }
   0x5   :  { %368 = vset.pattern.permute.xlu0 %v437_v24  ;;  %328 = vmatpush.msk.msra.mxu0 %vm93_vm3, %v440_v34  ;;  %v75_v36 = vand.u32 127, %v74_v35  ;;  %v344_v35 = vld [vmem:[%s533_s1 + $0x10] sm:$0xff]  ;;  %s443_s17 = smov 8   ;;  %s444_s18 = smov [#allocation4]  }
   0x6   :  { %331 = vmatpush.msk.msra.mxu1 %vm93_vm3, %v440_v34  ;;  %336 = vmatpush.msk.msra.mxu2 %vm93_vm3, %v440_v34  ;;  %s308_s0 = sshll.u32 %s444_s18, 4  ;;  %s309_s0 = int_to_ptr.vmem [resolvable:$true] %s308_s0 }
   0x7   :  { %340 = vmatpush.msk.msra.mxu3 %vm93_vm3, %v440_v34  ;;  %vm83_vm4 = vcmp.lt.s32.totalorder %v75_v36, 126  ;;  %vm76_vm5 = vcmp.lt.s32.totalorder %v75_v36, 2 }
   0xc   :  { %32 = vadd.xlane.f32.xlu0 %v31_v5 }
  0x77   :  { %v28_v6 = vpop.xlane.xlu0 %27 }
  0x78   :  { %v34_v7 = vmul.f32 0.00390625, %v28_v6 }
  0x7a   :  { %v36_v10 = vmul.f32 %v34_v7, %v34_v7 }
  0x7f   :  { %v33_v9 = vpop.xlane.xlu0 %32 }
  0x80   :  { %v35_v11 = vmul.f32 0.00390625, %v33_v9 }
  0x82   :  { %v37_v12 = vsub.f32 %v35_v11, %v36_v10 }
  0x84   :  { %v38_v13 = vadd.f32 1e-05, %v37_v12 }
  0x86   :  { %369 = vrsqrt.f32 %v38_v13  ;;  %vm45_vm1 = vweird.f32 %v38_v13 }
  0x8c   :  { %v370_v14 = vpop.eup %369 }
  0x8d   :  { %v40_v15 = vmul.f32 %v370_v14, %v38_v13  ;;  %vm46_vm0 = vweird.f32 %v370_v14 }
  0x8e   :  { %vm47_vm2 = vmor %vm45_vm1, %vm46_vm0  ;;  %vm253_vm0 = vcmask 1014784  }
  0x8f   :  { %v41_v16 = vmul.f32 %v370_v14, %v40_v15 }
  0x91   :  { %v42_v17 = vmul.f32 0.5, %v41_v16 }
  0x93   :  { %v43_v18 = vsub.f32 1.5, %v42_v17  ;;  %v20_v17 = vld [vmem:[%s534_s2 + $0x10] sm:$0xff] }
  0x95   :  { %v44_v20 = vmul.f32 %v370_v14, %v43_v18 }
  0x97   :  { %v48_v21 = vsel %vm47_vm2, %v370_v14, %v44_v20  ;;  %v22_v20 = vld [vmem:[%s534_s2 + $0x20] sm:$0xff] }
  0x98   :  { %v49_v22 = vmul.f32 %v48_v21, %v18_v19 }
  0x9a   :  { %v57_v23 = vmul.f32 %v49_v22, %v34_v7 }
  0x9c   :  { %59 = vrot.lane.b32.xlu1 %v57_v23, %s436_s20 }
  0xa4   :  { %52 = vperm.xlu1 %356, %v49_v22  }
 0x10e   :  { %v60_v25 = vpop.permute.xlu1 %59 }
 0x10f   :  { %v62_v26 = vsub.f32 %v18_v19, %v60_v25  ;;  %v255_v25 = vld [vmem:[%s533_s1] sm:$0xff] }
 0x111   :  { %65 = vperm.xlu2 %357, %v62_v26  }
 0x116   :  { %v53_v27 = vpop.permute.xlu1 %52 }
 0x117   :  { %v55_v28 = vmul.f32 %v53_v27, %v23_v0  ;;  %v56_v29 = vmul.f32 %v327_v1, %v53_v27 }
 0x16b   :  { %v66_v30 = vpop.permute.xlu2 %65 }
 0x16c   :  { %v479_v31 = vadd.f32 %v66_v30, %v55_v28  ;;  %v481_v32 = vadd.f32 %v66_v30, %v56_v29  ;;  %v256_v29 = vld [vmem:[%s533_s1 + $0x8] sm:$0xff]  ;;  %v345_v30 = vld [vmem:[%s533_s1 + $0x18] sm:$0xff]  ;;  %s297_s1 = sshll.u32 %s535_s3, 4  ;;  %s298_s1 = int_to_ptr.hbm [resolvable:$true] %s297_s1 }
 0x16e   :  { %v363_v33 = vpack.i.bf16 %v481_v32, %v479_v31 }
 0x170   :  { %364 = vrot.lane.b32.xlu0 %v363_v33, %s438_s21  ;;  %359 = vrot.lane.b32.xlu2 %v363_v33, %s439_s22  ;;  %s310_s21 = sshll.u32 %s536_s4, 4  ;;  %s311_s21 = int_to_ptr.hbm [resolvable:$true] %s310_s21 }
 0x1ca   :  { %v360_v37 = vpop.permute.xlu2 %359 }
 0x1cb   :  { %v362_v38 = vunpack.i.h.bf16 %v360_v37  ;;  %v361_v39 = vunpack.i.l.bf16 %v360_v37 }
 0x1cd   :  { %v84_v40 = vsel %vm83_vm4, %v361_v39, %v362_v38  ;;  %v85_v41 = vsel %vm83_vm4, %v362_v38, %v361_v39 }
 0x1ce   :  { %110 = vmatpush.msra.mxu0 %v84_v40  ;;  %133 = vmatpush.msra.mxu1 %v85_v41 }
 0x1d0   :  { %111 = vmatpush.msra.mxu0 %v479_v31  ;;  %134 = vmatpush.msra.mxu1 %v481_v32 }
 0x1e2   :  { %v365_v42 = vpop.permute.xlu0 %364 }
 0x1e3   :  { %v367_v43 = vunpack.i.h.bf16 %v365_v42  ;;  %v366_v44 = vunpack.i.l.bf16 %v365_v42 }
 0x1e5   :  { %v78_v45 = vsel %vm76_vm5, %v367_v43, %v366_v44  ;;  %v77_v46 = vsel %vm76_vm5, %v366_v44, %v367_v43 }
 0x1e6   :  { %112 = vmatpush.msra.mxu0 %v78_v45  ;;  %135 = vmatpush.msra.mxu1 %v77_v46 }
 0x1e7   :  { %329 = vmatmul.msk.f32.vlgmr.msra.gmra.mxu0 %vm86_vm6, %v18_v19  ;;  %332 = vmatmul.msk.f32.vlgmr.msra.gmra.mxu1 %vm86_vm6, %v18_v19  ;;  %v21_v19 = vld [vmem:[%s534_s2 + $0x18] sm:$0xff] }
 0x1ef   :  { %330 = vmatmul.msk.f32.gmra.mxu0 %vm86_vm6, %v19_v47  ;;  %333 = vmatmul.msk.f32.gmra.mxu1 %vm86_vm6, %v19_v47 }
 0x264   :  { %v114_v48 = vpop.f32.mrf.mxu0  ;;  %v137_v49 = vpop.f32.mrf.mxu1 }
 0x26c   :  { %v117_v50 = vpop.f32.mrf.mxu0  ;;  %v140_v51 = vpop.f32.mrf.mxu1 }
 0x26d   :  { %v334_v52 = vmul.f32 -1.442695, %v117_v50  ;;  %v335_v53 = vmul.f32 -1.442695, %v140_v51 }
 0x26f   :  { %371 = vpow2.f32 %v334_v52 }
 0x270   :  { %373 = vpow2.f32 %v335_v53 }
 0x275   :  { %v372_v54 = vpop.eup %371 }
 0x276   :  { %v374_v55 = vpop.eup %373  ;;  %v151_v56 = vadd.f32 1.0, %v372_v54 }
 0x277   :  { %v152_v57 = vadd.f32 1.0, %v374_v55 }
 0x278   :  { %375 = vrcp.f32 %v151_v56  ;;  %v164_v63 = vand.u32 2147483648, %v151_v56  ;;  %v162_v4 = vand.u32 2147483647, %v151_v56  ;;  %vm158_vm10 = vweird.f32 %v151_v56 }
 0x279   :  { %377 = vrcp.f32 %v152_v57  ;;  %v179_v0 = vand.u32 2147483648, %v152_v57  ;;  %vm173_vm7 = vweird.f32 %v152_v57  ;;  %v177_v2 = vand.u32 2147483647, %v152_v57 }
 0x27a   :  { %379 = vtanh.f32 %v114_v48  ;;  %v165_v8 = vor.u32 1.1754944e-38, %v164_v63  ;;  %vm163_vm14 = vcmp.eq.f32.partialorder %v162_v4, 8.507059e+37 }
 0x27b   :  { %381 = vtanh.f32 %v137_v49  ;;  %v180_v7 = vor.u32 1.1754944e-38, %v179_v0  ;;  %vm178_vm13 = vcmp.eq.f32.partialorder %v177_v2, 8.507059e+37 }
 0x27e   :  { %v376_v58 = vpop.eup %375 }
 0x27f   :  { %v378_v59 = vpop.eup %377  ;;  %v154_v60 = vmul.f32 %v376_v58, %v151_v56  ;;  %vm159_vm9 = vweird.f32 %v376_v58 }
 0x280   :  { %v169_v61 = vmul.f32 %v378_v59, %v152_v57  ;;  %vm174_vm8 = vweird.f32 %v378_v59  ;;  %vm160_vm12 = vmor %vm158_vm10, %vm159_vm9  ;;  %v380_v10 = vpop.eup %379 }
 0x281   :  { %v155_v62 = vsub.f32 1.0, %v154_v60  ;;  %vm175_vm11 = vmor %vm173_vm7, %vm174_vm8  ;;  %v382_v14 = vpop.eup %381 }
 0x282   :  { %v170_v1 = vsub.f32 1.0, %v169_v61 }
 0x283   :  { %v156_v3 = vmul.f32 %v376_v58, %v155_v62 }
 0x284   :  { %v171_v5 = vmul.f32 %v378_v59, %v170_v1 }
 0x285   :  { %v157_v6 = vadd.f32 %v376_v58, %v156_v3 }
 0x286   :  { %v172_v9 = vadd.f32 %v378_v59, %v171_v5 }
 0x287   :  { %v161_v11 = vsel %vm160_vm12, %v376_v58, %v157_v6 }
 0x288   :  { %v166_v12 = vsel %vm163_vm14, %v165_v8, %v161_v11  ;;  %v176_v13 = vsel %vm175_vm11, %v378_v59, %v172_v9 }
 0x289   :  { %v183_v15 = vmul.f32 %v380_v10, %v166_v12  ;;  %v181_v16 = vsel %vm178_vm13, %v180_v7, %v176_v13 }
 0x28a   :  { %v184_v18 = vmul.f32 %v382_v14, %v181_v16 }
 0x28b   :  { %210 = vmatpush.msra.mxu2 %v183_v15 }
 0x28c   :  { %236 = vmatpush.msra.mxu3 %v184_v18  ;;  %337 = vmatmul.msk.f32.vlgmr.msra.gmra.mxu2 %vm185_vm15, %v20_v17 }
 0x28d   :  { %341 = vmatmul.msk.f32.vlgmr.msra.gmra.mxu3 %vm185_vm15, %v20_v17 }
 0x294   :  { %338 = vmatmul.msk.f32.gmra.mxu2 %vm185_vm15, %v21_v19 }
 0x295   :  { %342 = vmatmul.msk.f32.gmra.mxu3 %vm185_vm15, %v21_v19 }
 0x29c   :  { %339 = vmatmul.msk.f32.gmra.mxu2 %vm185_vm15, %v22_v20 }
 0x29d   :  { %343 = vmatmul.msk.f32.gmra.mxu3 %vm185_vm15, %v22_v20 }
 0x30f   :  { %v212_v21 = vpop.f32.mrf.mxu2 }
 0x310   :  { %v247_v22 = vadd.f32 %v212_v21, %v479_v31  ;;  %v238_v23 = vpop.f32.mrf.mxu3 }
 0x311   :  { %v248_v24 = vadd.f32 %v238_v23, %v481_v32 }
 0x312   :  { %250 = vrot.lane.b32.xlu1 %v247_v22, %s439_s22 }
 0x313   :  { %270 = vrot.lane.b32.xlu2 %v248_v24, %s439_s22 }
 0x317   :  { %v215_v26 = vpop.f32.mrf.mxu2 }
 0x318   :  { %v257_v27 = vadd.f32 %v255_v25, %v215_v26  ;;  %v241_v28 = vpop.f32.mrf.mxu3 }
 0x319   :  { %v278_v36 = vadd.f32 %v344_v35, %v241_v28 }
 0x31b   :  { %261 = vrot.lane.b32.xlu2 %v257_v27, %s439_s22 }
 0x31f   :  { %v218_v31 = vpop.f32.mrf.mxu2 }
 0x320   :  { %v258_v32 = vadd.f32 %v256_v29, %v218_v31  ;;  %v244_v33 = vpop.f32.mrf.mxu3 }
 0x321   :  { %v279_v34 = vadd.f32 %v345_v30, %v244_v33 }
 0x322   :  { %263 = vrot.lane.b32.xlu1 %v258_v32, %s439_s22 }
 0x323   :  { %284 = vrot.lane.b32.xlu2 %v279_v34, %s439_s22 }
 0x32a   :  { %282 = vrot.lane.b32.xlu1 %v278_v36, %s439_s22 }
 0x36d   :  { %v271_v37 = vpop.permute.xlu2 %270 }
 0x36e   :  { %274 = vst.msk [vmem:[#allocation2 + $0x8] sm:$0xff] %vm253_vm0, %v271_v37 }
 0x375   :  { %v262_v38 = vpop.permute.xlu2 %261 }
 0x376   :  { %267 = vst.msk [vmem:[#allocation4] sm:$0xff] %vm253_vm0, %v262_v38 }
 0x37d   :  { %v285_v39 = vpop.permute.xlu2 %284 }
 0x37e   :  { %290 = vst.msk [vmem:[#allocation4 + $0x18] sm:$0xff] %vm253_vm0, %v285_v39 }
 0x384   :  { %v251_v40 = vpop.permute.xlu1 %250 }
 0x385   :  { %254 = vst.msk [vmem:[#allocation2] sm:$0xff] %vm253_vm0, %v251_v40 }
 0x386   :  { %303 = dma.vmem_to_hbm [thread:$0]  %s296_s13, 256, %s298_s1, [#allocation3], %s442_s16, %s442_s16, %s443_s17  }
 0x394   :  { %v264_v41 = vpop.permute.xlu1 %263 }
 0x395   :  { %268 = vst.msk [vmem:[#allocation4 + $0x8] sm:$0xff] %vm253_vm0, %v264_v41 }
 0x39c   :  { %v283_v42 = vpop.permute.xlu1 %282 }
 0x39d   :  { %289 = vst.msk [vmem:[#allocation4 + $0x10] sm:$0xff] %vm253_vm0, %v283_v42 }
 0x39e   :  { %316 = dma.vmem_to_hbm [thread:$0]  %s309_s0, 512, %s311_s21, [#allocation5], %s442_s16, %s442_s16, %s443_s17  }
 0x39f   :  { %431 = dma.done.wait [#allocation3], 256  }
 0x3a0   :  { %432 = vsyncadd [#allocation3], 4294967040 }
 0x3a1   :  { %433 = dma.done.wait [#allocation5], 512  }
 0x3a2   :  { %434 = vsyncadd [#allocation5], 4294966784 }
 0x3a3   :  { %325 = vsyncpa [#allocation3], 1 }
 0x3a4   :  { %326 = vsyncpa [#allocation5], 1 }

</bundles_post_ra>
